<compile_context>
chip_gen: v5e
topology: v5e:2x2
jax: 0.10.0
libtpu: 0.0.40
codegen_flags: <defaults>
</compile_context>

<pallas_src>
import jax
import jax.numpy as jnp
from jax.experimental import pallas as pl
from jax.experimental.pallas import tpu as pltpu


def _make_fused_brain_kernel(n_layers):
    """Kernel: refs = (x, w0, b0, ..., w{n-1}, b{n-1}, o). Chains tanh(x@W + b)."""
    def kernel(*refs):
        x_ref = refs[0]
        o_ref = refs[1 + 2 * n_layers]
        cur = x_ref[...].astype(jnp.float32)                 # (batch, in_f)
        for i in range(n_layers):                            # statically unrolled
            w_ref = refs[1 + 2 * i]                          # (in_f, out_f) bf16
            b_ref = refs[2 + 2 * i]                          # (1, out_f)  f32
            acc = jnp.dot(cur.astype(jnp.bfloat16), w_ref[...],
                          preferred_element_type=jnp.float32)    # MXU, f32 acc
            acc = acc + b_ref[...]                               # VPU, f32
            cur = jnp.tanh(acc)                                  # EUP, f32
        o_ref[...] = cur.astype(o_ref.dtype)
    return kernel


def prepare_brain_params(params):
    """One-time (outside jit): W -> bf16 (in, out) == PyTorch W^T, b -> f32 (1, out).

    No padding anywhere: every array is a full-array block, so the contraction
    (K) dim stays at its real size and weight DMA bytes are minimal.
    """
    prepared = []
    for w, b in params:
        prepared.append((w.astype(jnp.bfloat16),
                         b.reshape(1, -1).astype(jnp.float32)))
    return prepared


@jax.jit
def brain_forward(x, prepared_params):
    """Run the whole network in one un-gridded pallas_call (everything in VMEM)."""
    n_layers = len(prepared_params)
    batch = x.shape[0]
    out_features = prepared_params[-1][0].shape[1]

    flat_args = [x]
    for w, b in prepared_params:
        flat_args += [w, b]

    vmem_spec = pl.BlockSpec(memory_space=pltpu.MemorySpace.VMEM)
    return pl.pallas_call(
        _make_fused_brain_kernel(n_layers),
        out_shape=jax.ShapeDtypeStruct((batch, out_features), x.dtype),
        in_specs=[vmem_spec] * len(flat_args),
        out_specs=vmem_spec,
    )(*flat_args)


def init_brain_params(key, input_size, hidden_units, output_size,
                      dtype=jnp.float32):
    """Deterministic init mimicking nn.Linear's U(-1/sqrt(fan_in), 1/sqrt(fan_in))."""
    sizes = [input_size] + list(hidden_units) + [output_size]
    params = []
    for i in range(len(sizes) - 1):
        fan_in, fan_out = sizes[i], sizes[i + 1]
        key, kw, kb = jax.random.split(key, 3)
        bound = 1.0 / jnp.sqrt(jnp.asarray(fan_in, dtype))
        w = jax.random.uniform(kw, (fan_in, fan_out), dtype, -bound, bound)
        b = jax.random.uniform(kb, (fan_out,), dtype, -bound, bound)
        params.append((w, b))
    return params


def brain_forward_ref(x, params):
    """Pure-JAX f32 reference (unpadded) for correctness check."""
    for w, b in params:
        x = jnp.tanh(x @ w + b)
    return x


if __name__ == "__main__":
    key = jax.random.PRNGKey(0)

    batch = 2
    input_size = 16
    hidden_units = (32, 32)
    output_size = 8

    key, kx, kp = jax.random.split(key, 3)
    x = jax.random.normal(kx, (batch, input_size), dtype=jnp.float32)
    params = init_brain_params(kp, input_size, hidden_units, output_size)
    prepared_params = prepare_brain_params(params)   # one-time bf16 cast, outside jit

    out = brain_forward(x, prepared_params)
    out = jax.block_until_ready(out)

    ref = brain_forward_ref(x, params)
    assert out.shape == (batch, output_size)
    # Kernel feeds the MXU bf16 (f32 accumulation), so compare against the f32
    # reference with a tolerance that absorbs bf16 input rounding.
    assert jnp.allclose(out, ref, atol=5e-2, rtol=5e-2), "mismatch vs reference"

    print("KERNEL_OK")
</pallas_src>

<mosaic_0001>
module attributes {stable_mosaic.version = 11 : i64} {
  func.func @kernel(%arg0: memref<2x16xf32, #tpu.memory_space<vmem>>, %arg1: memref<16x32xbf16, #tpu.memory_space<vmem>>, %arg2: memref<1x32xf32, #tpu.memory_space<vmem>>, %arg3: memref<32x32xbf16, #tpu.memory_space<vmem>>, %arg4: memref<1x32xf32, #tpu.memory_space<vmem>>, %arg5: memref<32x8xbf16, #tpu.memory_space<vmem>>, %arg6: memref<1x8xf32, #tpu.memory_space<vmem>>, %arg7: memref<2x8xf32, #tpu.memory_space<vmem>>) attributes {dimension_semantics = [], scalar_prefetch = 0 : i64, scratch_operands = 0 : i64, tpu.core_type = #tpu.core_type<tc>} {
    %c0 = arith.constant 0 : index
    %c0_0 = arith.constant 0 : index
    %0 = vector.load %arg0[%c0, %c0_0] : memref<2x16xf32, #tpu.memory_space<vmem>>, vector<2x16xf32>
    %1 = arith.truncf %0 : vector<2x16xf32> to vector<2x16xbf16>
    %c0_1 = arith.constant 0 : index
    %c0_2 = arith.constant 0 : index
    %2 = vector.load %arg1[%c0_1, %c0_2] : memref<16x32xbf16, #tpu.memory_space<vmem>>, vector<16x32xbf16>
    %cst = arith.constant dense<0.000000e+00> : vector<2x32xf32>
    %3 = tpu.matmul %1, %2, %cst {dimension_numbers = #tpu.dot_dimension_numbers<[1], [0], [0], [1], [0, 0, 1, 1], [], []>} : vector<2x16xbf16>, vector<16x32xbf16>, vector<2x32xf32> -> vector<2x32xf32>
    %c0_3 = arith.constant 0 : index
    %c0_4 = arith.constant 0 : index
    %4 = vector.load %arg2[%c0_3, %c0_4] : memref<1x32xf32, #tpu.memory_space<vmem>>, vector<1x32xf32>
    %5 = vector.broadcast %4 : vector<1x32xf32> to vector<2x32xf32>
    %6 = arith.addf %3, %5 : vector<2x32xf32>
    %7 = math.tanh %6 : vector<2x32xf32>
    %8 = arith.truncf %7 : vector<2x32xf32> to vector<2x32xbf16>
    %c0_5 = arith.constant 0 : index
    %c0_6 = arith.constant 0 : index
    %9 = vector.load %arg3[%c0_5, %c0_6] : memref<32x32xbf16, #tpu.memory_space<vmem>>, vector<32x32xbf16>
    %cst_7 = arith.constant dense<0.000000e+00> : vector<2x32xf32>
    %10 = tpu.matmul %8, %9, %cst_7 {dimension_numbers = #tpu.dot_dimension_numbers<[1], [0], [0], [1], [0, 0, 1, 1], [], []>} : vector<2x32xbf16>, vector<32x32xbf16>, vector<2x32xf32> -> vector<2x32xf32>
    %c0_8 = arith.constant 0 : index
    %c0_9 = arith.constant 0 : index
    %11 = vector.load %arg4[%c0_8, %c0_9] : memref<1x32xf32, #tpu.memory_space<vmem>>, vector<1x32xf32>
    %12 = vector.broadcast %11 : vector<1x32xf32> to vector<2x32xf32>
    %13 = arith.addf %10, %12 : vector<2x32xf32>
    %14 = math.tanh %13 : vector<2x32xf32>
    %15 = arith.truncf %14 : vector<2x32xf32> to vector<2x32xbf16>
    %c0_10 = arith.constant 0 : index
    %c0_11 = arith.constant 0 : index
    %16 = vector.load %arg5[%c0_10, %c0_11] : memref<32x8xbf16, #tpu.memory_space<vmem>>, vector<32x8xbf16>
    %cst_12 = arith.constant dense<0.000000e+00> : vector<2x8xf32>
    %17 = tpu.matmul %15, %16, %cst_12 {dimension_numbers = #tpu.dot_dimension_numbers<[1], [0], [0], [1], [0, 0, 1, 1], [], []>} : vector<2x32xbf16>, vector<32x8xbf16>, vector<2x8xf32> -> vector<2x8xf32>
    %c0_13 = arith.constant 0 : index
    %c0_14 = arith.constant 0 : index
    %18 = vector.load %arg6[%c0_13, %c0_14] : memref<1x8xf32, #tpu.memory_space<vmem>>, vector<1x8xf32>
    %19 = vector.broadcast %18 : vector<1x8xf32> to vector<2x8xf32>
    %20 = arith.addf %17, %19 : vector<2x8xf32>
    %21 = math.tanh %20 : vector<2x8xf32>
    %c0_15 = arith.constant 0 : index
    %c0_16 = arith.constant 0 : index
    %22 = vector.load %arg7[%c0_15, %c0_16] : memref<2x8xf32, #tpu.memory_space<vmem>>, vector<2x8xf32>
    tpu.vector_store %arg7[%c0_15, %c0_16], %21 {strides = array<i32>} : memref<2x8xf32, #tpu.memory_space<vmem>>, vector<2x8xf32>,
    return
  }
}

</mosaic_0001>

<bundles_post_ra>
// kernel: brain_forward.1
= control target key start
LH: loop header
LB: loop body
LE: loop exit
PB: predicated region body
PF: predicated region fallthrough
CT: control target
= control target key end

     0   :  { %12 = vsyncpa [#allocation3], 0  ;;  %s339_s0 = inlined_call_operand.vmem [shape: f32[2,16], index: 0, kind: input, shape index: {}]   ;;  %s340_s1 = inlined_call_operand.hbm [shape: bf16[16,32], index: 1, kind: input, shape index: {}]   ;;  %s341_s2 = inlined_call_operand.vmem [shape: f32[1,32], index: 2, kind: input, shape index: {}]   ;;  %s342_s3 = inlined_call_operand.vmem [shape: bf16[32,32], index: 3, kind: input, shape index: {}]   ;;  %s343_s4 = inlined_call_operand.vmem [shape: f32[1,32], index: 4, kind: input, shape index: {}]   ;;  %s344_s5 = inlined_call_operand.vmem [shape: bf16[32,8], index: 5, kind: input, shape index: {}]   ;;  %s345_s6 = inlined_call_operand.vmem [shape: f32[1,8], index: 6, kind: input, shape index: {}]   ;;  %s346_s7 = inlined_call_operand.hbm [shape: f32[2,8], index: 7, kind: output, shape index: {}]  }
   0x1   :  { %13 = vsyncpa [#allocation4], 0  ;;  %s20_s26 = sshll.u32 %s340_s1, 4  ;;  %s265_s27 = smov [#allocation2]   ;;  %s21_s26 = int_to_ptr.hbm [resolvable:$true] %s20_s26 }
   0x2   :  { %s22_s28 = sshll.u32 %s265_s27, 4  ;;  %s266_s29 = smov 64   ;;  %s23_s28 = int_to_ptr.vmem [resolvable:$true] %s22_s28 }
   0x3   :  { %s267_s30 = smov 4  }
   0x4   :  { %28 = dma.hbm_to_vmem [thread:$0]  %s21_s26, 128, %s23_s28, [#allocation3], %s266_s29, %s266_s29, %s267_s30  }
   0x5   :  { %261 = dma.done.wait [#allocation3], 128  }
   0x6   :  { %262 = vsyncadd [#allocation3], 4294967168  ;;  %v195_v0 = vld [vmem:[#allocation2] sm:$0xff]  ;;  %vm58_vm0 = vcmask 130048   ;;  %v197_v3 = vld [vmem:[%s342_s3 + $0x8] sm:$0xff]  ;;  %vm97_vm1 = vcmask 261120  }
   0x7   :  { %v44_v1 = vld [vmem:[%s339_s0] sm:$0x3]  ;;  %69 = vmatpush.bf16.msra.mxu0 %v195_v0  ;;  %107 = vmatpush.bf16.msra.mxu1 %v197_v3  ;;  %v199_v11 = vld [vmem:[%s344_s5 + $0x8] sm:$0xff]  ;;  %vm153_vm2 = vcmask 58368  }
   0x8   :  { %v45_v2 = vpack.c.bf16 %v44_v1, %v44_v1  ;;  %v196_v4 = vld [vmem:[%s342_s3] sm:$0xff]  ;;  %145 = vmatpush.bf16.msra.mxu2 %v199_v11 }
   0x9   :  { %v204_v5 = vld [vmem:[%s341_s2] ss:$0 sm:$0xff] }
   0xa   :  { %176 = vmatmul.msk.bf16.vlgmr.msra.gmra.mxu0 %vm58_vm0, %v45_v2  ;;  %v198_v12 = vld [vmem:[%s344_s5] sm:$0xff]  ;;  %s268_s5 = smov [#allocation5]  }
   0xb   :  { %108 = vmatpush.bf16.msra.mxu1 %v196_v4  ;;  %v205_v13 = vld [vmem:[%s343_s4] ss:$0 sm:$0xff]  ;;  %s160_s20 = sshll.u32 %s268_s5, 4  ;;  %s162_s4 = sshll.u32 %s346_s7, 4  ;;  %s161_s20 = int_to_ptr.vmem [resolvable:$true] %s160_s20  ;;  %s163_s4 = int_to_ptr.hbm [resolvable:$true] %s162_s4 }
   0xc   :  { %146 = vmatpush.bf16.msra.mxu2 %v198_v12  ;;  %v206_v19 = vld [vmem:[%s345_s6] ss:$0 sm:$0xff] }
  0x87   :  { %v71_v6 = vpop.f32.mrf.mxu0 }
  0x88   :  { %v72_v7 = vadd.f32 %v204_v5, %v71_v6 }
  0x8a   :  { %207 = vtanh.f32 %v72_v7 }
  0x8f   :  { %v73_v8 = vpop.f32.mrf.mxu0 }
  0x90   :  { %v208_v9 = vpop.eup %207 }
  0x91   :  { %v76_v10 = vpack.c.bf16 %v208_v9, %v208_v9 }
  0x93   :  { %185 = vmatmul.msk.bf16.vlgmr.msra.gmra.mxu1 %vm97_vm1, %v76_v10 }
 0x110   :  { %v110_v14 = vpop.f32.mrf.mxu1 }
 0x111   :  { %v111_v15 = vadd.f32 %v205_v13, %v110_v14 }
 0x113   :  { %209 = vtanh.f32 %v111_v15 }
 0x118   :  { %v112_v16 = vpop.f32.mrf.mxu1 }
 0x119   :  { %v210_v17 = vpop.eup %209 }
 0x11a   :  { %v115_v18 = vpack.c.bf16 %v210_v17, %v210_v17 }
 0x11c   :  { %194 = vmatmul.msk.bf16.vlgmr.msra.gmra.mxu2 %vm97_vm1, %v115_v18 }
 0x19f   :  { %v148_v20 = vpop.f32.mrf.mxu2 }
 0x1a0   :  { %v149_v21 = vadd.f32 %v206_v19, %v148_v20 }
 0x1a2   :  { %211 = vtanh.f32 %v149_v21 }
 0x1a7   :  { %v150_v22 = vpop.f32.mrf.mxu2 }
 0x1a8   :  { %v212_v23 = vpop.eup %211 }
 0x1a9   :  { %154 = vst.msk [vmem:[#allocation5] sm:$0x3] %vm153_vm2, %v212_v23 }
 0x1aa   :  { %165 = dma.vmem_to_hbm [thread:$0]  %s161_s20, 32, %s163_s4, [#allocation4]  }
 0x1ab   :  { %263 = dma.done.wait [#allocation4], 32  }
 0x1ac   :  { %264 = vsyncadd [#allocation4], 4294967264 }
 0x1ad   :  { %170 = vsyncpa [#allocation3], 1 }
 0x1ae   :  { %171 = vsyncpa [#allocation4], 1 }

</bundles_post_ra>
